<compile_context>
chip_gen: v5e
topology: v5e:2x2
jax: 0.10.0
libtpu: 0.0.40
codegen_flags: <defaults>
</compile_context>

<pallas_src>
import functools

import jax
import jax.numpy as jnp
from jax.experimental import pallas as pl
from jax.experimental.pallas import tpu as pltpu


def _proj_kernel(x_ref, w_ref, o_ref):
    # x_ref: (TR, PACK*C) packed NHWC rows
    # w_ref: (PACK*C, PACK*OUT) block-diagonal kron(I_pack, W^T)
    # o_ref: (TR, PACK*OUT) -- lane-dense (PACK*OUT == 128 when packing is active)
    o_ref[...] = jnp.dot(
        x_ref[...], w_ref[...], preferred_element_type=jnp.float32
    ).astype(o_ref.dtype)


def _pick_row_tile(r, max_rows):
    """Row tile: a multiple of 8 (or the full extent) that divides r if possible."""
    max_rows = max(8, min(max_rows, r))
    if r <= max_rows:
        return r, r                         # single full-extent block (always legal)
    for t in range((max_rows // 8) * 8, 7, -8):
        if r % t == 0:
            return t, r                     # clean divisor -> no padding needed
    t = (max_rows // 8) * 8
    return t, pl.cdiv(r, t) * t             # rare fallback: pad the row count


@functools.partial(jax.jit, static_argnames=("target_tm", "vmem_budget_bytes"))
def fixed_linear_projection(x_nchw, weight, *, target_tm=16384,
                            vmem_budget_bytes=6 * 1024 * 1024):
    """x_nchw: (N, C, H, W); weight: (out_dim, in_dim) as in nn.Linear (no bias)."""
    n, c, h, w = x_nchw.shape
    out_dim, in_dim = weight.shape
    assert in_dim == c
    m = n * h * w

    # Pack factor: fold `pack` consecutive NHWC output rows into one 128-lane row
    # so output stores are unmasked full-lane vst instead of 32/128 masked stores.
    pack = 128 // out_dim if (out_dim < 128 and 128 % out_dim == 0) else 1
    if m % pack != 0:
        pack = 1

    # NCHW -> NHWC -> (M//pack, pack*C).  Transpose + reshape fuse into ONE XLA
    # relayout pass over the (small) input; everything after this is a free view.
    # TODO(synk): fold the NCHW->NHWC permute into the kernel itself (needs an
    # in-kernel cross-lane relayout of the x tile); kept outside for robustness.
    x_packed = jnp.transpose(x_nchw, (0, 2, 3, 1)).reshape(m // pack, pack * c)

    # Block-diagonal weight: kron(I_pack, W^T) makes the plain matmul emit the
    # packed (row-major bit-identical) output layout directly.
    w_big = jnp.kron(jnp.eye(pack, dtype=weight.dtype), weight.T)  # (pack*C, pack*OUT)

    r = m // pack
    kin, kout = pack * c, pack * out_dim

    # Row tile: big enough to amortize per-step overhead, small enough that the
    # double-buffered in+out blocks fit every generation's scoped-VMEM default.
    row_bytes = 4 * (kin + kout)                       # f32 in + out per packed row
    max_rows = max(8, min(max(target_tm // pack, 8),
                          vmem_budget_bytes // (2 * row_bytes)))
    tr, r_pad = _pick_row_tile(r, max_rows)
    if r_pad != r:                                     # rare: only if no clean divisor
        x_packed = jnp.pad(x_packed, ((0, r_pad - r), (0, 0)))

    cost = pl.CostEstimate(
        flops=2 * m * c * out_dim,
        transcendentals=0,
        bytes_accessed=4 * (m * c + m * out_dim + kin * kout),
    )

    out_packed = pl.pallas_call(
        _proj_kernel,
        out_shape=jax.ShapeDtypeStruct((r_pad, kout), x_nchw.dtype),
        grid_spec=pltpu.PrefetchScalarGridSpec(
            num_scalar_prefetch=0,
            grid=(r_pad // tr,),
            in_specs=[
                pl.BlockSpec((tr, kin), lambda i: (i, 0)),
                pl.BlockSpec((kin, kout), lambda i: (0, 0)),
            ],
            out_specs=pl.BlockSpec((tr, kout), lambda i: (i, 0)),
        ),
        compiler_params=pltpu.CompilerParams(
            dimension_semantics=("parallel",),
        ),
        cost_estimate=cost,
    )(x_packed, w_big)

    if r_pad != r:
        out_packed = out_packed[:r]
    # (M//pack, pack*OUT) row-major == (M, OUT) row-major == (N, H, W, OUT): free view.
    return out_packed.reshape(n, h, w, out_dim)


if __name__ == "__main__":
    key = jax.random.PRNGKey(0)
    k_x, k_w = jax.random.split(key)

    # Small shapes consistent with the module: NCHW input, in_dim = C.
    N, C, H, W = 2, 4, 16, 16
    OUT_DIM = 32

    x = jax.random.normal(k_x, (N, C, H, W), dtype=jnp.float32)
    # nn.Linear weight shape (out_dim, in_dim), init normal(mean=0, std=0.1)
    weight = 0.1 * jax.random.normal(k_w, (OUT_DIM, C), dtype=jnp.float32)

    out = fixed_linear_projection(x, weight)
    out = jax.block_until_ready(out)

    # Reference check in plain JAX (same semantics as the PyTorch module).
    ref = jnp.einsum("nchw,oc->nhwo", x, weight)
    assert out.shape == (N, H, W, OUT_DIM)
    assert jnp.allclose(out, ref, atol=1e-5, rtol=1e-5)

    print("KERNEL_OK")
</pallas_src>

<mosaic_0001>
module attributes {stable_mosaic.version = 11 : i64} {
  func.func @_proj_kernel(%arg0: i32, %arg1: memref<128x16xf32, #tpu.memory_space<vmem>>, %arg2: memref<16x128xf32, #tpu.memory_space<vmem>>, %arg3: memref<128x128xf32, #tpu.memory_space<vmem>>) attributes {dimension_semantics = [#tpu.dimension_semantics<parallel>], iteration_bounds = array<i64: 1>, scalar_prefetch = 0 : i64, scratch_operands = 0 : i64, tpu.core_type = #tpu.core_type<tc>, window_params = [{transform_indices = @transform_0, window_bounds = array<i64: 128, 16>}, {pipeline_mode = #tpu.pipeline_mode<synchronous>, transform_indices = @transform_1, window_bounds = array<i64: 16, 128>}, {transform_indices = @transform_2, window_bounds = array<i64: 128, 128>}]} {
    %c0 = arith.constant 0 : index
    %c0_0 = arith.constant 0 : index
    %0 = vector.load %arg1[%c0, %c0_0] : memref<128x16xf32, #tpu.memory_space<vmem>>, vector<128x16xf32>
    %c0_1 = arith.constant 0 : index
    %c0_2 = arith.constant 0 : index
    %1 = vector.load %arg2[%c0_1, %c0_2] : memref<16x128xf32, #tpu.memory_space<vmem>>, vector<16x128xf32>
    %cst = arith.constant dense<0.000000e+00> : vector<128x128xf32>
    %2 = tpu.matmul %0, %1, %cst {dimension_numbers = #tpu.dot_dimension_numbers<[1], [0], [0], [1], [0, 0, 1, 1], [], []>} : vector<128x16xf32>, vector<16x128xf32>, vector<128x128xf32> -> vector<128x128xf32>
    %c0_3 = arith.constant 0 : index
    %c0_4 = arith.constant 0 : index
    %3 = vector.load %arg3[%c0_3, %c0_4] : memref<128x128xf32, #tpu.memory_space<vmem>>, vector<128x128xf32>
    tpu.vector_store %arg3[%c0_3, %c0_4], %2 {strides = array<i32>} : memref<128x128xf32, #tpu.memory_space<vmem>>, vector<128x128xf32>,
    return
  }
  func.func @transform_0(%arg0: i32) -> (i32, i32) {
    %c0_i32 = arith.constant 0 : i32
    %c0_i32_0 = arith.constant 0 : i32
    return %arg0, %c0_i32 : i32, i32
  }
  func.func @transform_1(%arg0: i32) -> (i32, i32) {
    %c0_i32 = arith.constant 0 : i32
    %c0_i32_0 = arith.constant 0 : i32
    %c0_i32_1 = arith.constant 0 : i32
    return %c0_i32, %c0_i32_0 : i32, i32
  }
  func.func @transform_2(%arg0: i32) -> (i32, i32) {
    %c0_i32 = arith.constant 0 : i32
    %c0_i32_0 = arith.constant 0 : i32
    return %arg0, %c0_i32 : i32, i32
  }
}

</mosaic_0001>

<bundles_post_ra>
// kernel: fixed_linear_projection.1
= control target key start
LH: loop header
LB: loop body
LE: loop exit
PB: predicated region body
PF: predicated region fallthrough
CT: control target
= control target key end

     0   :  { %vm29_vm0 = vcmask 130048   ;;  %s318_s1 = inlined_call_operand.vmem [shape: f32[16,128], index: 1, kind: input, shape index: {}]   ;;  %s319_s0 = inlined_call_operand.vmem [shape: f32[128,16], index: 0, kind: input, shape index: {}]   ;;  %s320_s2 = inlined_call_operand.vmem [shape: f32[128,128], index: 2, kind: output, shape index: {}]  }
   0x1   :  { %v28_v0 = vld [vmem:[%s318_s1 + $0x8] sm:$0xff]  ;;  %v27_v1 = vld [vmem:[%s318_s1] sm:$0xff]  ;;  %v21_v10 = vld [vmem:[%s319_s0 + $0x50] sm:$0xff] }
   0x2   :  { %180 = vmatpush.msra.mxu2 %v28_v0  ;;  %181 = vmatpush.msra.mxu3 %v28_v0  ;;  %v19_v2 = vld [vmem:[%s319_s0 + $0x40] sm:$0xff]  ;;  %v20_v6 = vld [vmem:[%s319_s0 + $0x48] sm:$0xff]  ;;  %v25_v11 = vld [vmem:[%s319_s0 + $0x70] sm:$0xff] }
   0x3   :  { %v23_v3 = vld [vmem:[%s319_s0 + $0x60] sm:$0xff]  ;;  %92 = vmatpush.msra.mxu0 %v28_v0  ;;  %179 = vmatpush.msra.mxu1 %v28_v0  ;;  %v24_v7 = vld [vmem:[%s319_s0 + $0x68] sm:$0xff]  ;;  %v13_v12 = vld [vmem:[%s319_s0 + $0x10] sm:$0xff] }
   0x4   :  { %183 = vmatpush.msra.mxu2 %v27_v1  ;;  %184 = vmatpush.msra.mxu3 %v27_v1  ;;  %v11_v4 = vld [vmem:[%s319_s0] sm:$0xff]  ;;  %v12_v8 = vld [vmem:[%s319_s0 + $0x8] sm:$0xff]  ;;  %v17_v13 = vld [vmem:[%s319_s0 + $0x30] sm:$0xff] }
   0x5   :  { %v15_v5 = vld [vmem:[%s319_s0 + $0x20] sm:$0xff]  ;;  %171 = vmatmul.msk.f32.vlgmr.msra.gmra.mxu2 %vm29_vm0, %v19_v2  ;;  %175 = vmatmul.msk.f32.vlgmr.msra.gmra.mxu3 %vm29_vm0, %v23_v3  ;;  %v16_v9 = vld [vmem:[%s319_s0 + $0x28] sm:$0xff]  ;;  %v22_v14 = vld [vmem:[%s319_s0 + $0x58] sm:$0xff] }
   0x6   :  { %93 = vmatpush.msra.mxu0 %v27_v1  ;;  %182 = vmatpush.msra.mxu1 %v27_v1  ;;  %v26_v15 = vld [vmem:[%s319_s0 + $0x78] sm:$0xff] }
   0x7   :  { %163 = vmatmul.msk.f32.vlgmr.msra.gmra.mxu0 %vm29_vm0, %v11_v4  ;;  %167 = vmatmul.msk.f32.vlgmr.msra.gmra.mxu1 %vm29_vm0, %v15_v5  ;;  %v14_v16 = vld [vmem:[%s319_s0 + $0x18] sm:$0xff] }
   0x8   :  { %v18_v17 = vld [vmem:[%s319_s0 + $0x38] sm:$0xff] }
   0xd   :  { %172 = vmatmul.msk.f32.gmra.mxu2 %vm29_vm0, %v20_v6  ;;  %176 = vmatmul.msk.f32.gmra.mxu3 %vm29_vm0, %v24_v7 }
   0xf   :  { %164 = vmatmul.msk.f32.gmra.mxu0 %vm29_vm0, %v12_v8  ;;  %168 = vmatmul.msk.f32.gmra.mxu1 %vm29_vm0, %v16_v9 }
  0x15   :  { %173 = vmatmul.msk.f32.gmra.mxu2 %vm29_vm0, %v21_v10  ;;  %177 = vmatmul.msk.f32.gmra.mxu3 %vm29_vm0, %v25_v11 }
  0x17   :  { %165 = vmatmul.msk.f32.gmra.mxu0 %vm29_vm0, %v13_v12  ;;  %169 = vmatmul.msk.f32.gmra.mxu1 %vm29_vm0, %v17_v13 }
  0x1d   :  { %174 = vmatmul.msk.f32.gmra.mxu2 %vm29_vm0, %v22_v14  ;;  %178 = vmatmul.msk.f32.gmra.mxu3 %vm29_vm0, %v26_v15 }
  0x1f   :  { %166 = vmatmul.msk.f32.gmra.mxu0 %vm29_vm0, %v14_v16  ;;  %170 = vmatmul.msk.f32.gmra.mxu1 %vm29_vm0, %v18_v17 }
  0x84   :  { %v95_v18 = vpop.f32.mrf.mxu0  ;;  %v107_v19 = vpop.f32.mrf.mxu1 }
  0x85   :  { %143 = vst [vmem:[%s320_s2] sm:$0xff] %v95_v18 }
  0x86   :  { %147 = vst [vmem:[%s320_s2 + $0x20] sm:$0xff] %v107_v19 }
  0x88   :  { %v119_v20 = vpop.f32.mrf.mxu2  ;;  %v131_v21 = vpop.f32.mrf.mxu3 }
  0x89   :  { %151 = vst [vmem:[%s320_s2 + $0x40] sm:$0xff] %v119_v20 }
  0x8a   :  { %155 = vst [vmem:[%s320_s2 + $0x60] sm:$0xff] %v131_v21 }
  0x8c   :  { %v98_v22 = vpop.f32.mrf.mxu0  ;;  %v110_v23 = vpop.f32.mrf.mxu1 }
  0x8d   :  { %144 = vst [vmem:[%s320_s2 + $0x8] sm:$0xff] %v98_v22 }
  0x8e   :  { %148 = vst [vmem:[%s320_s2 + $0x28] sm:$0xff] %v110_v23 }
  0x90   :  { %v122_v24 = vpop.f32.mrf.mxu2  ;;  %v134_v25 = vpop.f32.mrf.mxu3 }
  0x91   :  { %152 = vst [vmem:[%s320_s2 + $0x48] sm:$0xff] %v122_v24 }
  0x92   :  { %156 = vst [vmem:[%s320_s2 + $0x68] sm:$0xff] %v134_v25 }
  0x94   :  { %v101_v26 = vpop.f32.mrf.mxu0  ;;  %v113_v27 = vpop.f32.mrf.mxu1 }
  0x95   :  { %145 = vst [vmem:[%s320_s2 + $0x10] sm:$0xff] %v101_v26 }
  0x96   :  { %149 = vst [vmem:[%s320_s2 + $0x30] sm:$0xff] %v113_v27 }
  0x98   :  { %v125_v28 = vpop.f32.mrf.mxu2  ;;  %v137_v29 = vpop.f32.mrf.mxu3 }
  0x99   :  { %153 = vst [vmem:[%s320_s2 + $0x50] sm:$0xff] %v125_v28 }
  0x9a   :  { %157 = vst [vmem:[%s320_s2 + $0x70] sm:$0xff] %v137_v29 }
  0x9c   :  { %v104_v30 = vpop.f32.mrf.mxu0  ;;  %v116_v31 = vpop.f32.mrf.mxu1 }
  0x9d   :  { %146 = vst [vmem:[%s320_s2 + $0x18] sm:$0xff] %v104_v30 }
  0x9e   :  { %150 = vst [vmem:[%s320_s2 + $0x38] sm:$0xff] %v116_v31 }
  0xa0   :  { %v128_v32 = vpop.f32.mrf.mxu2  ;;  %v140_v33 = vpop.f32.mrf.mxu3 }
  0xa1   :  { %154 = vst [vmem:[%s320_s2 + $0x58] sm:$0xff] %v128_v32 }
  0xa2   :  { %158 = vst [vmem:[%s320_s2 + $0x78] sm:$0xff] %v140_v33 }

</bundles_post_ra>
